<compile_context>
chip_gen: v6e
topology: v6e:2x2x1
jax: 0.10.0
libtpu: 0.0.40
codegen_flags: <defaults>
</compile_context>

<pallas_src>
import functools

import numpy as np
import jax
import jax.numpy as jnp
from jax.experimental import pallas as pl
from jax.experimental.pallas import tpu as pltpu


def _round_up(x, m):
    return ((x + m - 1) // m) * m


def _pick_tile_m(M, Kp, Ep, in_bytes, out_bytes, budget_bytes=12 * 2**20):
    """Pick the M tile so 2*TM*(Kp*in + Ep*out) + 2*Kp*Ep*in fits the budget.

    The 12 MiB budget is deliberately below the smallest scoped-VMEM default
    across generations (v5e 16 MiB; v7x has 64 MiB physical / 32 MiB scoped),
    so the same code compiles everywhere without vmem_limit_bytes overrides.
    """
    per_row = 2 * (Kp * in_bytes + Ep * out_bytes)      # double-buffered in+out tiles
    avail = max(budget_bytes - 2 * Kp * Ep * in_bytes,  # resident (double-buffered) weight
                per_row * 8)
    tm = min(avail // per_row, 4096)
    if tm >= 256:
        tm = (tm // 256) * 256          # full-width MXU tiles on v6e/v7x (v5e ok too)
    else:
        tm = max(8, (tm // 8) * 8)
    return int(min(tm, _round_up(M, 8)))


def _patch_embed_kernel(x_ref, w_ref, b_ref, o_ref):
    # x_ref: (TM, Kp)  patch rows for this grid step (compute dtype, e.g. bf16)
    # w_ref: (Kp, Ep)  projection weight (compute dtype) — VMEM-resident
    # b_ref: (1,  Ep)  bias (f32) — VMEM-resident
    # o_ref: (TM, Ep)  output tile (x.dtype)
    acc = jnp.dot(x_ref[...], w_ref[...], preferred_element_type=jnp.float32)
    o_ref[...] = (acc + b_ref[...].astype(jnp.float32)).astype(o_ref.dtype)


@functools.partial(jax.jit, static_argnames=("patch_size", "compute_dtype"))
def patch_embedding(x, weight, bias, patch_size, compute_dtype=jnp.bfloat16):
    """x: (B, C, H, W) NCHW (PyTorch layout). weight: (E, C, p, p). bias: (E,)."""
    B, C, H, W = x.shape
    E = weight.shape[0]
    p = patch_size
    assert H % p == 0 and W % p == 0, "spatial dims must be divisible by patch_size"
    Hp, Wp = H // p, W // p
    n_patches = Hp * Wp
    K = C * p * p
    M = B * n_patches

    # ---- glue: patch extraction fused with the compute-dtype cast (one pass
    # under jit, instead of a transpose round trip followed by a cast). ----
    xp = x.reshape(B, C, Hp, p, Wp, p)
    xp = jnp.transpose(xp, (0, 2, 4, 1, 3, 5)).astype(compute_dtype)
    patches = xp.reshape(M, K)
    # TODO(synk): for very large ViT shapes, fold patch extraction into the
    # kernel (DMA (C,p,W) slabs straight from NCHW) to drop this pass entirely.

    # conv weight (E, C, p, p) -> matmul weight (K, E); in a real model this
    # transpose would be done once outside the hot path.
    w_mat = weight.reshape(E, K).T.astype(compute_dtype)
    b_mat = bias.reshape(1, E).astype(jnp.float32)

    # ---- lane-dense padding: K, E to multiples of 128 (no-op for ViT-base). ----
    Kp = _round_up(K, 128)
    Ep = _round_up(E, 128)

    in_bytes = np.dtype(compute_dtype).itemsize
    out_bytes = np.dtype(x.dtype).itemsize
    TM = _pick_tile_m(M, Kp, Ep, in_bytes, out_bytes)
    Mp = _round_up(M, TM)

    patches = jnp.pad(patches, ((0, Mp - M), (0, Kp - K)))
    w_mat = jnp.pad(w_mat, ((0, Kp - K), (0, Ep - E)))
    b_mat = jnp.pad(b_mat, ((0, 0), (0, Ep - E)))

    out = pl.pallas_call(
        _patch_embed_kernel,
        out_shape=jax.ShapeDtypeStruct((Mp, Ep), x.dtype),
        grid_spec=pltpu.PrefetchScalarGridSpec(
            num_scalar_prefetch=0,
            grid=(Mp // TM,),
            in_specs=[
                pl.BlockSpec((TM, Kp), lambda i: (i, 0)),   # activations: tiled over M
                pl.BlockSpec((Kp, Ep), lambda i: (0, 0)),   # weight: stays resident
                pl.BlockSpec((1, Ep), lambda i: (0, 0)),    # bias: stays resident
            ],
            out_specs=pl.BlockSpec((TM, Ep), lambda i: (i, 0)),
        ),
        compiler_params=pltpu.CompilerParams(
            # Row tiles are independent -> shard the loop across v7x's 2 TCs.
            dimension_semantics=("parallel",),
        ),
    )(patches, w_mat, b_mat)

    return out[:M, :E].reshape(B, n_patches, E)


def _reference(x, weight, bias, patch_size):
    # Pure-JAX reference using lax conv (NCHW / OIHW), mirroring PyTorch exactly.
    y = jax.lax.conv_general_dilated(
        x, weight,
        window_strides=(patch_size, patch_size),
        padding="VALID",
        dimension_numbers=("NCHW", "OIHW", "NCHW"),
    ) + bias[None, :, None, None]
    B, E, Hp, Wp = y.shape
    return jnp.transpose(y.reshape(B, E, Hp * Wp), (0, 2, 1))


if __name__ == "__main__":
    # Small shapes consistent with the module: img=16, patch=4, C=4, embed=32.
    B, C, H, W = 2, 4, 16, 16
    patch_size = 4
    embed_dim = 32

    key = jax.random.PRNGKey(0)
    kx, kw, kb = jax.random.split(key, 3)
    x = jax.random.normal(kx, (B, C, H, W), dtype=jnp.float32)
    weight = (jax.random.normal(kw, (embed_dim, C, patch_size, patch_size),
                                dtype=jnp.float32) * 0.02)
    bias = jax.random.normal(kb, (embed_dim,), dtype=jnp.float32) * 0.01

    ref = _reference(x, weight, bias, patch_size)
    n_patches = (H // patch_size) * (W // patch_size)

    # Fast path: bf16 activations/weight, f32 accumulation (default).
    out = patch_embedding(x, weight, bias, patch_size=patch_size)
    out = jax.block_until_ready(out)
    assert out.shape == (B, n_patches, embed_dim)
    assert jnp.allclose(out, ref, atol=2e-2, rtol=2e-2), "bf16 path mismatch"

    # Full-precision path: f32 end to end, tight tolerance vs. the conv reference.
    out_f32 = patch_embedding(x, weight, bias, patch_size=patch_size,
                              compute_dtype=jnp.float32)
    out_f32 = jax.block_until_ready(out_f32)
    assert jnp.allclose(out_f32, ref, atol=1e-4, rtol=1e-4), "f32 path mismatch"

    print("KERNEL_OK")
</pallas_src>

<mosaic_0001>
module attributes {stable_mosaic.version = 11 : i64} {
  func.func @_patch_embed_kernel(%arg0: i32, %arg1: memref<32x128xbf16, #tpu.memory_space<vmem>>, %arg2: memref<128x128xbf16, #tpu.memory_space<vmem>>, %arg3: memref<1x128xf32, #tpu.memory_space<vmem>>, %arg4: memref<32x128xf32, #tpu.memory_space<vmem>>) attributes {dimension_semantics = [#tpu.dimension_semantics<parallel>], iteration_bounds = array<i64: 1>, scalar_prefetch = 0 : i64, scratch_operands = 0 : i64, tpu.core_type = #tpu.core_type<tc>, window_params = [{transform_indices = @transform_0, window_bounds = array<i64: 32, 128>}, {pipeline_mode = #tpu.pipeline_mode<synchronous>, transform_indices = @transform_1, window_bounds = array<i64: 128, 128>}, {pipeline_mode = #tpu.pipeline_mode<synchronous>, transform_indices = @transform_2, window_bounds = array<i64: 1, 128>}, {transform_indices = @transform_3, window_bounds = array<i64: 32, 128>}]} {
    %c0 = arith.constant 0 : index
    %c0_0 = arith.constant 0 : index
    %0 = vector.load %arg1[%c0, %c0_0] : memref<32x128xbf16, #tpu.memory_space<vmem>>, vector<32x128xbf16>
    %c0_1 = arith.constant 0 : index
    %c0_2 = arith.constant 0 : index
    %1 = vector.load %arg2[%c0_1, %c0_2] : memref<128x128xbf16, #tpu.memory_space<vmem>>, vector<128x128xbf16>
    %cst = arith.constant dense<0.000000e+00> : vector<32x128xf32>
    %2 = tpu.matmul %0, %1, %cst {dimension_numbers = #tpu.dot_dimension_numbers<[1], [0], [0], [1], [0, 0, 1, 1], [], []>} : vector<32x128xbf16>, vector<128x128xbf16>, vector<32x128xf32> -> vector<32x128xf32>
    %c0_3 = arith.constant 0 : index
    %c0_4 = arith.constant 0 : index
    %3 = vector.load %arg3[%c0_3, %c0_4] : memref<1x128xf32, #tpu.memory_space<vmem>>, vector<1x128xf32>
    %4 = vector.broadcast %3 : vector<1x128xf32> to vector<32x128xf32>
    %5 = arith.addf %2, %4 : vector<32x128xf32>
    %c0_5 = arith.constant 0 : index
    %c0_6 = arith.constant 0 : index
    %6 = vector.load %arg4[%c0_5, %c0_6] : memref<32x128xf32, #tpu.memory_space<vmem>>, vector<32x128xf32>
    tpu.vector_store %arg4[%c0_5, %c0_6], %5 {strides = array<i32>} : memref<32x128xf32, #tpu.memory_space<vmem>>, vector<32x128xf32>,
    return
  }
  func.func @transform_0(%arg0: i32) -> (i32, i32) {
    %c0_i32 = arith.constant 0 : i32
    %c0_i32_0 = arith.constant 0 : i32
    return %arg0, %c0_i32 : i32, i32
  }
  func.func @transform_1(%arg0: i32) -> (i32, i32) {
    %c0_i32 = arith.constant 0 : i32
    %c0_i32_0 = arith.constant 0 : i32
    %c0_i32_1 = arith.constant 0 : i32
    return %c0_i32, %c0_i32_0 : i32, i32
  }
  func.func @transform_2(%arg0: i32) -> (i32, i32) {
    %c0_i32 = arith.constant 0 : i32
    %c0_i32_0 = arith.constant 0 : i32
    %c0_i32_1 = arith.constant 0 : i32
    return %c0_i32, %c0_i32_0 : i32, i32
  }
  func.func @transform_3(%arg0: i32) -> (i32, i32) {
    %c0_i32 = arith.constant 0 : i32
    %c0_i32_0 = arith.constant 0 : i32
    return %arg0, %c0_i32 : i32, i32
  }
}

</mosaic_0001>

<bundles_post_ra>
// kernel: patch_embedding.1
= control target key start
LH: loop header
LB: loop body
LE: loop exit
PB: predicated region body
PF: predicated region fallthrough
CT: control target
= control target key end

     0   :  { %s307_s0 = inlined_call_operand.vmem [shape: bf16[32,128], index: 0, kind: input, shape index: {}]   ;;  %s308_s1 = inlined_call_operand.vmem [shape: bf16[128,128], index: 1, kind: input, shape index: {}]   ;;  %s309_s2 = inlined_call_operand.vmem [shape: f32[1,128], index: 2, kind: input, shape index: {}]   ;;  %s310_s3 = inlined_call_operand.hbm [shape: f32[32,128], index: 3, kind: output, shape index: {}]  }
   0x1   :  { %v216_v0 = vld [vmem:[%s308_s1 + $0x38] sm:$0xff]   ;;  %v217_v1 = vld [vmem:[%s308_s1 + $0x30] sm:$0xff]   ;;  %v218_v2 = vld [vmem:[%s308_s1 + $0x28] sm:$0xff]  }
   0x2   :  { %193 = vmatprep.subr.bf16.mxu0 %v216_v0  ;;  %v219_v3 = vld [vmem:[%s308_s1 + $0x20] sm:$0xff]  }
   0x3   :  { %194 = vmatpush3.bf16.msra.mxu0 %v216_v0  ;;  %v224_v4 = vld [vmem:[%s307_s0] sm:$0xff]  }
   0x4   :  { %195 = vmatprep.subr.bf16.mxu0 %v217_v1  ;;  %209 = vmatprep.mubr.bf16.mxu0 %v224_v4 }
   0x7   :  { %196 = vmatpush3.bf16.msra.mxu0 %v217_v1 }
   0x8   :  { %197 = vmatprep.subr.bf16.mxu0 %v218_v2 }
   0x9   :  { %8 = vsyncpa [#allocation3], 0  ;;  %v220_v5 = vld [vmem:[%s308_s1 + $0x18] sm:$0xff]   ;;  %v221_v6 = vld [vmem:[%s308_s1 + $0x10] sm:$0xff]   ;;  %s248_s7 = smov [#allocation2]  }
   0xa   :  { %v222_v7 = vld [vmem:[%s308_s1 + $0x8] sm:$0xff]   ;;  %v223_v8 = vld [vmem:[%s308_s1] sm:$0xff]   ;;  %s161_s8 = sshll.u32 %s248_s7, 4  ;;  %s162_s8 = int_to_ptr.vmem [resolvable:$true] %s161_s8 }
   0xb   :  { %198 = vmatpush3.bf16.msra.mxu0 %v218_v2  ;;  %v225_v9 = vld [vmem:[%s307_s0 + $0x8] sm:$0xff]   ;;  %v172_v10 = vld [vmem:[%s309_s2] ss:$0 sm:$0xff]  ;;  %s226_s0 = scalar_lea.vmem %s162_s8, 512  ;;  %p231_p1 = scmp.lt.s32.totalorder %s162_s8, %s162_s8 }
   0xc   :  { %199 = vmatprep.subr.bf16.mxu0 %v219_v3  ;;  %p227_p0 = scmp.ne.s32.totalorder %s162_s8, %s226_s0  ;;  %p232_p2 = scmp.lt.s32.totalorder %s226_s0, %s226_s0 }
   0xe   :  { %p233_p3 = por %p232_p2, %p231_p1 }
   0xf   :  { %200 = vmatpush3.bf16.msra.mxu0 %v219_v3 }
  0x10   :  { %201 = vmatprep.subr.bf16.mxu0 %v220_v5  ;;  %p234_p4 = pnand %p233_p3, %p227_p0 }
  0x13   :  { %202 = vmatpush3.bf16.msra.mxu0 %v220_v5 }
  0x14   :  { %203 = vmatprep.subr.bf16.mxu0 %v221_v6 }
  0x17   :  { %204 = vmatpush3.bf16.msra.mxu0 %v221_v6 }
  0x18   :  { %205 = vmatprep.subr.bf16.mxu0 %v222_v7 }
  0x1b   :  { %206 = vmatpush3.bf16.msra.mxu0 %v222_v7 }
  0x1c   :  { %207 = vmatprep.subr.bf16.mxu0 %v223_v8 }
  0x1f   :  { %208 = vmatpush3.bf16.msra.mxu0 %v223_v8 }
  0x22   :  { %210 = vmatmul.mubr.bf16.vlgmr.msra.gmra.mxu0 %v225_v9 }
  0xe2   :  { %v211_v11 = vpop.f32.mrf.mxu0 }
  0xe3   :  { %v146_v12 = vadd.f32 %v211_v11, %v172_v10 }
  0xe4   :  { %v137_v13 = vpop.f32.mrf.mxu0 }
  0xe5   :  { %154 = vst [vmem:[#allocation2 + $0x10] sm:$0xff] %v146_v12  ;;  %v138_v14 = vadd.f32 %v172_v10, %v137_v13 }
  0xe6   :  { %v212_v15 = vpop.f32.mrf.mxu0 }
  0xe7   :  { %152 = vst [vmem:[#allocation2] sm:$0xff] %v138_v14  ;;  %v149_v16 = vadd.f32 %v212_v15, %v172_v10 }
  0xe8   :  { %v140_v17 = vpop.f32.mrf.mxu0 }
  0xe9   :  { %155 = vst [vmem:[#allocation2 + $0x18] sm:$0xff] %v149_v16  ;;  %v141_v18 = vadd.f32 %v172_v10, %v140_v17 }
  0xeb   :  { %153 = vst [vmem:[#allocation2 + $0x8] sm:$0xff] %v141_v18 }
  0xec   :  { %237 = shalt.err (!%p234_p4)
}
  0xed   :  { %s249_s1 = smov 128   ;;  %s250_s2 = smov 8  }
  0xee   :  { %167 = dma.vmem_to_hbm [thread:$0]  %s162_s8, 512, %s310_s3, [#allocation3], %s249_s1, %s249_s1, %s250_s2  }
  0xef   :  { %246 = dma.done.wait [#allocation3], 512  }
  0xf0   :  { %247 = vsyncadd [#allocation3], 4294966784 }
  0xf1   :  { %171 = vsyncpa [#allocation3], 1 }

</bundles_post_ra>
